<compile_context>
chip_gen: v6e
topology: v6e:2x2x1
jax: 0.10.0
libtpu: 0.0.40
codegen_flags: <defaults>
</compile_context>

<pallas_src>
import numpy as np
import jax
import jax.numpy as jnp
from jax.experimental import pallas as pl
from jax.experimental.pallas import tpu as pltpu


EDGE_NODE_VALS = {
    'scene_graph': {
        'edge_indices': [[0, 0], [1, 1], [2, 2], [0, 1], [0, 2]],
        'node_num': 3, 'edge_num': 2},
    'scene_graph_2': {
        'edge_indices': [[0, 0], [1, 1], [2, 2], [3, 3], [4, 4], [5, 5],
                         [6, 6], [7, 7], [0, 1], [0, 2], [0, 3], [0, 4],
                         [0, 5], [0, 6], [0, 7]],
        'node_num': 8, 'edge_num': 7},
}


class Config:
    graph_type = 'scene_graph'  # -> 'scene_graph_2' per _get_graph_type_from_config


def _get_graph_type_from_config(config):
    if hasattr(config, 'graph_type'):
        if config.graph_type == 'pedestrian_graph':
            return 'pedestrian_graph_2'
        elif config.graph_type == 'combined_graph':
            return 'combined_graph_2'
        elif config.graph_type == 'scene_graph':
            return 'scene_graph_2'
    return 'scene_graph'


def get_pe_2d_np(sparse_edge_index, edge12_indices, node_num, E, half_pos_enc_dim):
    """Tokengt-style 2D Laplacian PE (host-side glue, deterministic).

    Eigenvectors of the symmetric-normalized Laplacian of the (undirected)
    sparse graph, zero-padded to half_pos_enc_dim columns; each token (a node
    pair from edge12_indices) gets the concatenation of its two endpoint rows.
    Returns [E, 2 * half_pos_enc_dim] float32.
    """
    A = np.zeros((node_num, node_num), dtype=np.float64)
    for u, v in zip(sparse_edge_index[0], sparse_edge_index[1]):
        A[u, v] = 1.0
        A[v, u] = 1.0
    deg = A.sum(axis=1)
    d_inv_sqrt = np.clip(deg, 1.0, None) ** -0.5
    L = np.eye(node_num) - (d_inv_sqrt[:, None] * A) * d_inv_sqrt[None, :]
    # TODO(synk): eigendecomposition has no Pallas equivalent; done in numpy (host, init-time only).
    _, eigvec = np.linalg.eigh(L)
    eigvec = np.pad(eigvec, ((0, 0), (0, half_pos_enc_dim - node_num)))
    src = edge12_indices[:, 0]
    dst = edge12_indices[:, 1]
    pe = np.concatenate([eigvec[src], eigvec[dst]], axis=-1)  # [E, 2*half]
    return pe.astype(np.float32)


def _round_up(x, m):
    return ((x + m - 1) // m) * m


# ---------------------------------------------------------------------------
# Pallas kernel: fused linear layer  out = x @ w + b  (single full-array block)
# ---------------------------------------------------------------------------
def _linear_kernel(x_ref, w_ref, b_ref, o_ref):
    o_ref[...] = (
        jnp.dot(x_ref[...], w_ref[...], preferred_element_type=jnp.float32)
        + b_ref[...]
    ).astype(o_ref.dtype)


def laplacian_encoder_pallas(pe_pad, w_pad, b_pad):
    """pe_pad: [Tp, Fp] f32, w_pad: [Fp, Dp], b_pad: [1, Dp] -> [Tp, Dp].

    All dims are pre-padded lane/sublane friendly (Tp % 8 == 0, Fp % 128 == 0,
    Dp % 128 == 0) so loads, the MXU feed and the output stores are unmasked.
    """
    Tp, Fp = pe_pad.shape
    Dp = w_pad.shape[1]
    return pl.pallas_call(
        _linear_kernel,
        out_shape=jax.ShapeDtypeStruct((Tp, Dp), jnp.float32),
        grid=(1,),
        in_specs=[
            pl.BlockSpec((Tp, Fp), lambda i: (0, 0)),
            pl.BlockSpec((Fp, Dp), lambda i: (0, 0)),
            pl.BlockSpec((1, Dp), lambda i: (0, 0)),
        ],
        out_specs=pl.BlockSpec((Tp, Dp), lambda i: (0, 0)),
        compiler_params=pltpu.CompilerParams(
            dimension_semantics=("arbitrary",)),
    )(pe_pad, w_pad, b_pad)


class LaplacianEmbeddingJax:
    def __init__(self, config, d_model, key):
        self.dim_hidden = d_model
        self.lap_node_id_dim = 42
        graph_type = _get_graph_type_from_config(config)
        self.edge_indices = np.asarray(
            EDGE_NODE_VALS[graph_type]['edge_indices'], dtype=np.int64)
        self.node_num = EDGE_NODE_VALS[graph_type]['node_num']
        self.edge_num = EDGE_NODE_VALS[graph_type]['edge_num']
        self.E = self.edge_indices.shape[0]

        # Deterministic synthetic parameters for nn.Linear(42, d_model):
        # weight [d_model, 42], bias [d_model]
        kw, kb = jax.random.split(key)
        bound = 1.0 / np.sqrt(self.lap_node_id_dim)
        self.weight = jax.random.uniform(
            kw, (d_model, self.lap_node_id_dim), jnp.float32, -bound, bound)
        self.bias = jax.random.uniform(
            kb, (d_model,), jnp.float32, -bound, bound)

        # ---- init-time host glue (hoisted out of __call__) -----------------
        sparse_edge_index = self.edge_indices[self.node_num:, :].T  # [2, n_edges]
        pe_one = get_pe_2d_np(
            sparse_edge_index, self.edge_indices, self.node_num, self.E,
            half_pos_enc_dim=self.lap_node_id_dim // 2)             # [E, 42]

        # Pad to lane/sublane-friendly shapes: rows E->mult of 8,
        # contraction F=42->mult of 128, output D->mult of 128 (lane-dense
        # output avoids masked vst.msk partial stores).
        E_pad = _round_up(self.E, 8)
        F_pad = _round_up(self.lap_node_id_dim, 128)
        D_pad = _round_up(d_model, 128)
        self.E_pad, self.F_pad, self.D_pad = E_pad, F_pad, D_pad

        pe_pad = np.zeros((E_pad, F_pad), dtype=np.float32)
        pe_pad[:self.E, :self.lap_node_id_dim] = pe_one
        self.pe_pad = jnp.asarray(pe_pad)                           # device f32

        w_t = np.asarray(self.weight).T                             # [42, D]
        w_pad = np.zeros((F_pad, D_pad), dtype=np.float32)
        w_pad[:self.lap_node_id_dim, :d_model] = w_t
        self.w_pad = jnp.asarray(w_pad)

        b_pad = np.zeros((1, D_pad), dtype=np.float32)
        b_pad[0, :d_model] = np.asarray(self.bias)
        self.b_pad = jnp.asarray(b_pad)

    def __call__(self, x):
        bsize = x.shape[0]
        # pe is batch-invariant: run the kernel once on the padded [E_pad, F_pad]
        # slab, slice out the valid [E, D] block, broadcast over the batch.
        out_pad = laplacian_encoder_pallas(
            self.pe_pad, self.w_pad, self.b_pad)                    # [E_pad, D_pad]
        out = out_pad[:self.E, :self.dim_hidden]                    # [E, D]
        return jnp.broadcast_to(out[None], (bsize, self.E, self.dim_hidden))


if __name__ == "__main__":
    key = jax.random.PRNGKey(0)
    k_param, k_x = jax.random.split(key)

    d_model = 32
    module = LaplacianEmbeddingJax(Config(), d_model, k_param)

    # forward() only uses x.shape[0]; give it a small token-like input.
    bsize, E = 2, len(EDGE_NODE_VALS['scene_graph_2']['edge_indices'])
    x = jax.random.normal(k_x, (bsize, E, 42), dtype=jnp.float32)

    out = module(x)
    out = jax.block_until_ready(out)

    # sanity check against a plain-JAX reference of the linear hot path
    edge12 = module.edge_indices
    pe_one_ref = get_pe_2d_np(edge12[module.node_num:, :].T, edge12,
                              module.node_num, edge12.shape[0], 21)  # [E, 42]
    pe_ref = np.broadcast_to(pe_one_ref[None], (bsize, E, 42))       # [B, E, 42]
    ref = jnp.einsum('bef,df->bed', jnp.asarray(pe_ref), module.weight) + module.bias
    assert out.shape == (bsize, E, d_model), out.shape
    np.testing.assert_allclose(np.asarray(out), np.asarray(ref), rtol=1e-5, atol=1e-5)

    print("KERNEL_OK")
</pallas_src>

<mosaic_0001>
module attributes {stable_mosaic.version = 11 : i64} {
  func.func @_linear_kernel(%arg0: i32, %arg1: memref<16x128xf32, #tpu.memory_space<vmem>>, %arg2: memref<128x128xf32, #tpu.memory_space<vmem>>, %arg3: memref<1x128xf32, #tpu.memory_space<vmem>>, %arg4: memref<16x128xf32, #tpu.memory_space<vmem>>) attributes {dimension_semantics = [#tpu.dimension_semantics<arbitrary>], iteration_bounds = array<i64: 1>, scalar_prefetch = 0 : i64, scratch_operands = 0 : i64, tpu.core_type = #tpu.core_type<tc>, window_params = [{pipeline_mode = #tpu.pipeline_mode<synchronous>, transform_indices = @transform_0, window_bounds = array<i64: 16, 128>}, {pipeline_mode = #tpu.pipeline_mode<synchronous>, transform_indices = @transform_1, window_bounds = array<i64: 128, 128>}, {pipeline_mode = #tpu.pipeline_mode<synchronous>, transform_indices = @transform_2, window_bounds = array<i64: 1, 128>}, {pipeline_mode = #tpu.pipeline_mode<synchronous>, transform_indices = @transform_3, window_bounds = array<i64: 16, 128>}]} {
    %c0 = arith.constant 0 : index
    %c0_0 = arith.constant 0 : index
    %0 = vector.load %arg1[%c0, %c0_0] : memref<16x128xf32, #tpu.memory_space<vmem>>, vector<16x128xf32>
    %c0_1 = arith.constant 0 : index
    %c0_2 = arith.constant 0 : index
    %1 = vector.load %arg2[%c0_1, %c0_2] : memref<128x128xf32, #tpu.memory_space<vmem>>, vector<128x128xf32>
    %cst = arith.constant dense<0.000000e+00> : vector<16x128xf32>
    %2 = tpu.matmul %0, %1, %cst {dimension_numbers = #tpu.dot_dimension_numbers<[1], [0], [0], [1], [0, 0, 1, 1], [], []>} : vector<16x128xf32>, vector<128x128xf32>, vector<16x128xf32> -> vector<16x128xf32>
    %c0_3 = arith.constant 0 : index
    %c0_4 = arith.constant 0 : index
    %3 = vector.load %arg3[%c0_3, %c0_4] : memref<1x128xf32, #tpu.memory_space<vmem>>, vector<1x128xf32>
    %4 = vector.broadcast %3 : vector<1x128xf32> to vector<16x128xf32>
    %5 = arith.addf %2, %4 : vector<16x128xf32>
    %c0_5 = arith.constant 0 : index
    %c0_6 = arith.constant 0 : index
    %6 = vector.load %arg4[%c0_5, %c0_6] : memref<16x128xf32, #tpu.memory_space<vmem>>, vector<16x128xf32>
    tpu.vector_store %arg4[%c0_5, %c0_6], %5 {strides = array<i32>} : memref<16x128xf32, #tpu.memory_space<vmem>>, vector<16x128xf32>,
    return
  }
  func.func @transform_0(%arg0: i32) -> (i32, i32) {
    %c0_i32 = arith.constant 0 : i32
    %c0_i32_0 = arith.constant 0 : i32
    %c0_i32_1 = arith.constant 0 : i32
    return %c0_i32, %c0_i32_0 : i32, i32
  }
  func.func @transform_1(%arg0: i32) -> (i32, i32) {
    %c0_i32 = arith.constant 0 : i32
    %c0_i32_0 = arith.constant 0 : i32
    %c0_i32_1 = arith.constant 0 : i32
    return %c0_i32, %c0_i32_0 : i32, i32
  }
  func.func @transform_2(%arg0: i32) -> (i32, i32) {
    %c0_i32 = arith.constant 0 : i32
    %c0_i32_0 = arith.constant 0 : i32
    %c0_i32_1 = arith.constant 0 : i32
    return %c0_i32, %c0_i32_0 : i32, i32
  }
  func.func @transform_3(%arg0: i32) -> (i32, i32) {
    %c0_i32 = arith.constant 0 : i32
    %c0_i32_0 = arith.constant 0 : i32
    %c0_i32_1 = arith.constant 0 : i32
    return %c0_i32, %c0_i32_0 : i32, i32
  }
}

</mosaic_0001>

<bundles_post_ra>
// kernel: tpu_custom_call.1
= control target key start
LH: loop header
LB: loop body
LE: loop exit
PB: predicated region body
PF: predicated region fallthrough
CT: control target
= control target key end

     0   :  { %8 = vsyncpa [#allocation3], 0  ;;  %s334_s0 = inlined_call_operand.hbm [shape: f32[16,128], index: 0, kind: input, shape index: {}]   ;;  %s335_s1 = inlined_call_operand.hbm [shape: f32[128,128], index: 1, kind: input, shape index: {}]   ;;  %s336_s2 = inlined_call_operand.vmem [shape: f32[1,128], index: 2, kind: input, shape index: {}]   ;;  %s337_s3 = inlined_call_operand.hbm [shape: f32[16,128], index: 3, kind: output, shape index: {}]  }
   0x1   :  { %9 = vsyncpa [#allocation6], 0 }
   0x2   :  { %10 = vsyncpa [#allocation4], 0  ;;  %s288_s12 = smov [#allocation2]  }
   0x3   :  { %s16_s13 = sshll.u32 %s288_s12, 4  ;;  %s17_s13 = int_to_ptr.vmem [resolvable:$true] %s16_s13 }
   0x4   :  { %s230_s14 = scalar_lea.vmem %s17_s13, 256  ;;  %p235_p1 = scmp.lt.s32.totalorder %s17_s13, %s17_s13 }
   0x5   :  { %p231_p0 = scmp.ne.s32.totalorder %s17_s13, %s230_s14  ;;  %p236_p2 = scmp.lt.s32.totalorder %s230_s14, %s230_s14 }
   0x7   :  { %p237_p3 = por %p236_p2, %p235_p1 }
   0x9   :  { %p238_p4 = pnand %p237_p3, %p231_p0 }
   0xb   :  { %241 = shalt.err (!%p238_p4)
}
   0xc   :  { %s289_s15 = smov 128   ;;  %s290_s16 = smov 8  }
   0xd   :  { %22 = dma.hbm_to_vmem [thread:$0]  %s334_s0, 256, %s17_s13, [#allocation3], %s289_s15, %s289_s15, %s290_s16  }
   0xe   :  { %s291_s19 = smov [#allocation5]  }
   0xf   :  { %s28_s20 = sshll.u32 %s291_s19, 4  ;;  %s29_s20 = int_to_ptr.vmem [resolvable:$true] %s28_s20 }
  0x10   :  { %s250_s21 = scalar_lea.vmem %s29_s20, 2048  ;;  %p255_p6 = scmp.lt.s32.totalorder %s29_s20, %s29_s20 }
  0x11   :  { %p251_p5 = scmp.ne.s32.totalorder %s29_s20, %s250_s21  ;;  %p256_p7 = scmp.lt.s32.totalorder %s250_s21, %s250_s21 }
  0x13   :  { %p257_p8 = por %p256_p7, %p255_p6 }
  0x15   :  { %p258_p9 = pnand %p257_p8, %p251_p5 }
  0x17   :  { %261 = shalt.err (!%p258_p9)
}
  0x18   :  { %34 = dma.hbm_to_vmem [thread:$0]  %s335_s1, 2048, %s29_s20, [#allocation6], %s289_s15, %s289_s15, %s290_s16  }
  0x19   :  { %282 = dma.done.wait [#allocation3], 256  }
  0x1a   :  { %283 = vsyncadd [#allocation3], 4294967040 }
  0x1b   :  { %284 = dma.done.wait [#allocation6], 2048  }
  0x1c   :  { %285 = vsyncadd [#allocation6], 4294965248  ;;  %v60_v0 = vld [vmem:[#allocation5 + $0x78] sm:$0xff]  ;;  %v59_v1 = vld [vmem:[#allocation5 + $0x70] sm:$0xff]  ;;  %s292_s24 = smov [#allocation7]  }
  0x1d   :  { %182 = vmatprep.subr.mxu0 %v60_v0  ;;  %v58_v2 = vld [vmem:[#allocation5 + $0x68] sm:$0xff]  ;;  %v57_v3 = vld [vmem:[#allocation5 + $0x60] sm:$0xff]  ;;  %v43_v4 = vld [vmem:[#allocation2] sm:$0xff]  ;;  %s150_s25 = sshll.u32 %s292_s24, 4  ;;  %s151_s25 = int_to_ptr.vmem [resolvable:$true] %s150_s25 }
  0x1e   :  { %183 = vmatpush3.msra.mxu0 %v60_v0  ;;  %v56_v5 = vld [vmem:[#allocation5 + $0x58] sm:$0xff]  ;;  %214 = vmatprep.mubr.f32.mxu0 %v43_v4  ;;  %v55_v6 = vld [vmem:[#allocation5 + $0x50] sm:$0xff]  ;;  %v54_v7 = vld [vmem:[#allocation5 + $0x48] sm:$0xff]  ;;  %s262_s26 = scalar_lea.vmem %s151_s25, 256  ;;  %p267_p11 = scmp.lt.s32.totalorder %s151_s25, %s151_s25 }
  0x1f   :  { %184 = vmatprep.subr.mxu0 %v59_v1  ;;  %v53_v8 = vld [vmem:[#allocation5 + $0x40] sm:$0xff]  ;;  %v52_v9 = vld [vmem:[#allocation5 + $0x38] sm:$0xff]  ;;  %v51_v10 = vld [vmem:[#allocation5 + $0x30] sm:$0xff]  ;;  %p263_p10 = scmp.ne.s32.totalorder %s151_s25, %s262_s26  ;;  %p268_p12 = scmp.lt.s32.totalorder %s262_s26, %s262_s26 }
  0x20   :  { %185 = vmatpush3.msra.mxu0 %v59_v1  ;;  %v50_v11 = vld [vmem:[#allocation5 + $0x28] sm:$0xff]  ;;  %v49_v12 = vld [vmem:[#allocation5 + $0x20] sm:$0xff]  ;;  %v48_v13 = vld [vmem:[#allocation5 + $0x18] sm:$0xff] }
  0x21   :  { %186 = vmatprep.subr.mxu0 %v58_v2  ;;  %v47_v14 = vld [vmem:[#allocation5 + $0x10] sm:$0xff]  ;;  %v46_v15 = vld [vmem:[#allocation5 + $0x8] sm:$0xff]  ;;  %v45_v16 = vld [vmem:[#allocation5] sm:$0xff]  ;;  %p269_p13 = por %p268_p12, %p267_p11 }
  0x22   :  { %187 = vmatpush3.msra.mxu0 %v58_v2  ;;  %v44_v17 = vld [vmem:[#allocation2 + $0x8] sm:$0xff]  ;;  %v163_v18 = vld [vmem:[%s336_s2] ss:$0 sm:$0xff] }
  0x23   :  { %188 = vmatprep.subr.mxu0 %v57_v3  ;;  %p270_p0 = pnand %p269_p13, %p263_p10 }
  0x24   :  { %189 = vmatpush3.msra.mxu0 %v57_v3 }
  0x25   :  { %190 = vmatprep.subr.mxu0 %v56_v5 }
  0x26   :  { %191 = vmatpush3.msra.mxu0 %v56_v5 }
  0x27   :  { %192 = vmatprep.subr.mxu0 %v55_v6 }
  0x28   :  { %193 = vmatpush3.msra.mxu0 %v55_v6 }
  0x29   :  { %194 = vmatprep.subr.mxu0 %v54_v7 }
  0x2a   :  { %195 = vmatpush3.msra.mxu0 %v54_v7 }
  0x2b   :  { %196 = vmatprep.subr.mxu0 %v53_v8 }
  0x2c   :  { %197 = vmatpush3.msra.mxu0 %v53_v8 }
  0x2d   :  { %198 = vmatprep.subr.mxu0 %v52_v9 }
  0x2e   :  { %199 = vmatpush3.msra.mxu0 %v52_v9 }
  0x2f   :  { %200 = vmatprep.subr.mxu0 %v51_v10 }
  0x30   :  { %201 = vmatpush3.msra.mxu0 %v51_v10 }
  0x31   :  { %202 = vmatprep.subr.mxu0 %v50_v11 }
  0x32   :  { %203 = vmatpush3.msra.mxu0 %v50_v11 }
  0x33   :  { %204 = vmatprep.subr.mxu0 %v49_v12 }
  0x34   :  { %205 = vmatpush3.msra.mxu0 %v49_v12 }
  0x35   :  { %206 = vmatprep.subr.mxu0 %v48_v13 }
  0x36   :  { %207 = vmatpush3.msra.mxu0 %v48_v13 }
  0x37   :  { %208 = vmatprep.subr.mxu0 %v47_v14 }
  0x38   :  { %209 = vmatpush3.msra.mxu0 %v47_v14 }
  0x39   :  { %210 = vmatprep.subr.mxu0 %v46_v15 }
  0x3a   :  { %211 = vmatpush3.msra.mxu0 %v46_v15 }
  0x3b   :  { %212 = vmatprep.subr.mxu0 %v45_v16 }
  0x3c   :  { %213 = vmatpush3.msra.mxu0 %v45_v16 }
  0x3d   :  { %215 = vmatmul.mubr.f32.vlgmr.msra.gmra.mxu0 %v44_v17 }
  0xfd   :  { %v216_v19 = vpop.f32.mrf.mxu0 }
  0xfe   :  { %v140_v20 = vadd.f32 %v216_v19, %v163_v18 }
  0xff   :  { %v134_v21 = vpop.f32.mrf.mxu0 }
 0x100   :  { %144 = vst [vmem:[#allocation7 + $0x8] sm:$0xff] %v140_v20  ;;  %v135_v22 = vadd.f32 %v163_v18, %v134_v21 }
 0x102   :  { %143 = vst [vmem:[#allocation7] sm:$0xff] %v135_v22 }
 0x103   :  { %273 = shalt.err (!%p270_p0)
}
 0x104   :  { %156 = dma.vmem_to_hbm [thread:$0]  %s151_s25, 256, %s337_s3, [#allocation4], %s289_s15, %s289_s15, %s290_s16  }
 0x105   :  { %286 = dma.done.wait [#allocation4], 256  }
 0x106   :  { %287 = vsyncadd [#allocation4], 4294967040 }
 0x107   :  { %160 = vsyncpa [#allocation3], 1 }
 0x108   :  { %161 = vsyncpa [#allocation6], 1 }
 0x109   :  { %162 = vsyncpa [#allocation4], 1 }

</bundles_post_ra>
